<compile_context>
chip_gen: v5e
topology: v5e:2x2
jax: 0.10.0
libtpu: 0.0.40
codegen_flags: <defaults>
</compile_context>

<pallas_src>
import jax
import jax.numpy as jnp
from jax import lax
from jax.experimental import pallas as pl
from jax.experimental.pallas import tpu as pltpu

K = 25          # Conv1d kernel size (hard-coded in the module)
DILATION = 2    # Conv1d dilation (hard-coded in the module)
BN_EPS = 1e-5   # nn.BatchNorm1d default eps
LANE = 128
_PATCH_VMEM_BUDGET = 6 * 1024 * 1024   # per-buffer budget for the im2col block


def _round_up(x, m):
    return (x + m - 1) // m * m


def _decoder_kernel(patch_ref, w1_ref, b1_ref, w2_ref, b2_ref, w3_ref, b3_ref,
                    o_ref):
    """Fused decoder on one lane-tile of im2col columns.

    patch_ref: (K*C_in, M_blk) bf16 im2col columns (k-major rows); batch*time on lanes
    w1_ref   : (C_mid, K*C_in) bf16 dilated-conv weight with BN1 scale folded in
    b1_ref   : (C_mid, 1)      f32  folded conv1-bias + BN1 bias
    w2_ref   : (C_mid, C_mid)  bf16 1x1 conv weight with BN2 scale folded in
    b2_ref   : (C_mid, 1)      f32  folded conv2-bias + BN2 bias
    w3_ref   : (NC, C_mid)     f32  final 1x1 conv weight (tiny -> keep f32)
    b3_ref   : (NC, 1)         f32  final conv bias
    o_ref    : (NC, M_blk)     f32  lane-dense logits tile
    """
    # Layer 1: dilated Conv1d(k=25,d=2) as ONE deep-contraction MXU matmul.
    h1 = jnp.dot(w1_ref[...], patch_ref[...], preferred_element_type=jnp.float32)
    h1 = jnp.maximum(h1 + b1_ref[...], 0.0)

    # Layer 2: 1x1 conv (+ folded BN2) + ReLU.
    h2 = jnp.dot(w2_ref[...], h1.astype(w2_ref.dtype),
                 preferred_element_type=jnp.float32)
    h2 = jnp.maximum(h2 + b2_ref[...], 0.0)

    # Layer 3: final 1x1 conv to num_classes (f32 epilogue), lane-dense store.
    out = jnp.dot(w3_ref[...], h2, preferred_element_type=jnp.float32)
    o_ref[...] = out + b3_ref[...]


def _im2col_channel_major(x_nct, t_out):
    """(B, C_in, T) -> (K*C_in, B*t_out); rows k-major, columns b-major/t-minor."""
    B, c_in, _ = x_nct.shape
    taps = [x_nct[:, :, k * DILATION:k * DILATION + t_out] for k in range(K)]
    patch = jnp.stack(taps, axis=1)                 # (B, K, C_in, t_out)
    patch = jnp.transpose(patch, (1, 2, 0, 3))      # (K, C_in, B, t_out)
    return patch.reshape(K * c_in, B * t_out)


def wav2kws_decoder_pallas(x_nct, folded):
    """x_nct: (B, C_in, T) float32. Returns (B, num_classes, T_out) f32 logits."""
    B, c_in, T = x_nct.shape
    w1f, b1, w2f, b2, w3, b3 = folded
    c_mid = w1f.shape[0]
    nc = w3.shape[0]
    kc = K * c_in
    t_out = T - DILATION * (K - 1)
    m = B * t_out

    # im2col once in the wrapper (layout restructuring, not compute): the kernel
    # then sees a contiguous, lane-dense slab and never does unaligned lane slices.
    patch = _im2col_channel_major(x_nct, t_out).astype(jnp.bfloat16)

    # Lane-dense tiling of the column (batch*time) axis; block size capped by a
    # VMEM budget so double-buffered bf16 patch blocks fit even for real wav2vec
    # shapes (C_in=768) on the smaller v5e/v7x scoped VMEM.
    m_aligned = _round_up(m, LANE)
    blk_cap = max(LANE, (_PATCH_VMEM_BUDGET // (kc * 2 * 2)) // LANE * LANE)
    m_blk = min(512, blk_cap, m_aligned)
    m_pad = _round_up(m_aligned, m_blk)
    patch = jnp.pad(patch, ((0, 0), (0, m_pad - m)))

    flops = 2 * m_pad * (c_mid * kc + c_mid * c_mid + nc * c_mid)
    bytes_accessed = (patch.size * 2 + w1f.size * 2 + w2f.size * 2 + w3.size * 4
                      + (b1.size + b2.size + b3.size) * 4 + nc * m_pad * 4)

    out = pl.pallas_call(
        _decoder_kernel,
        out_shape=jax.ShapeDtypeStruct((nc, m_pad), jnp.float32),
        grid=(m_pad // m_blk,),
        in_specs=[
            pl.BlockSpec((kc, m_blk), lambda i: (0, i)),
            pl.BlockSpec((c_mid, kc), lambda i: (0, 0)),
            pl.BlockSpec((c_mid, 1), lambda i: (0, 0)),
            pl.BlockSpec((c_mid, c_mid), lambda i: (0, 0)),
            pl.BlockSpec((c_mid, 1), lambda i: (0, 0)),
            pl.BlockSpec((nc, c_mid), lambda i: (0, 0)),
            pl.BlockSpec((nc, 1), lambda i: (0, 0)),
        ],
        out_specs=pl.BlockSpec((nc, m_blk), lambda i: (0, i)),
        compiler_params=pltpu.CompilerParams(
            dimension_semantics=("parallel",),
            vmem_limit_bytes=32 * 1024 * 1024,
        ),
        cost_estimate=pl.CostEstimate(
            flops=flops, transcendentals=0, bytes_accessed=bytes_accessed),
    )(patch, w1f, b1, w2f, b2, w3, b3)

    # (NC, B*t_out) lane-dense slab -> (B, NC, t_out)
    out = out[:, :m].reshape(nc, B, t_out)
    return jnp.transpose(out, (1, 0, 2))


def fold_params(p):
    """Fold conv biases + eval-mode BatchNorm into the conv weights/biases."""
    s1 = p["bn1_gamma"] / jnp.sqrt(p["bn1_var"] + BN_EPS)
    b1 = s1 * (p["conv1_b"] - p["bn1_mean"]) + p["bn1_beta"]
    s2 = p["bn2_gamma"] / jnp.sqrt(p["bn2_var"] + BN_EPS)
    b2 = s2 * (p["conv2_b"] - p["bn2_mean"]) + p["bn2_beta"]

    c_mid, c_in, _ = p["conv1_w"].shape
    # BN1 scale folded into the conv weight; flatten to (C_mid, K*C_in) with the
    # contraction axis k-major to match the im2col row order.
    w1f = (p["conv1_w"] * s1[:, None, None]).transpose(0, 2, 1).reshape(c_mid, K * c_in)
    w2f = p["conv2_w"][:, :, 0] * s2[:, None]
    w3 = p["conv3_w"][:, :, 0]

    col = lambda v: v[:, None].astype(jnp.float32)
    return (w1f.astype(jnp.bfloat16), col(b1),
            w2f.astype(jnp.bfloat16), col(b2),
            w3.astype(jnp.float32), col(p["conv3_b"]))


def wav2kws_forward(encoder_feats_btc, params, training=False):
    """Faithful to Wav2KWS.forward given the w2v encoder output `output['x']`."""
    b, t, c = encoder_feats_btc.shape
    # PyTorch: output.reshape(b, c, t) -- row-major reinterpretation, NOT a transpose
    # (faithful to the module; only "correct" when t == c, as in the test).
    x_nct = jnp.reshape(encoder_feats_btc, (b, c, t)).astype(jnp.float32)
    out = wav2kws_decoder_pallas(x_nct, fold_params(params))
    out = jnp.squeeze(out)                                 # .squeeze()
    if training:
        return jax.nn.softmax(out, axis=-1)                # nn.Softmax(dim=-1)
    return out


def reference_forward(encoder_feats_btc, params, training=False):
    """Pure-JAX reference for verification."""
    p = params
    b, t, c = encoder_feats_btc.shape
    x = jnp.reshape(encoder_feats_btc, (b, c, t)).astype(jnp.float32)

    def bn(y, gamma, beta, mean, var):
        return ((y - mean[None, :, None]) / jnp.sqrt(var + BN_EPS)[None, :, None]
                * gamma[None, :, None] + beta[None, :, None])

    y = lax.conv_general_dilated(x, p["conv1_w"], window_strides=(1,),
                                 padding="VALID", rhs_dilation=(DILATION,),
                                 dimension_numbers=("NCH", "OIH", "NCH"))
    y = y + p["conv1_b"][None, :, None]
    y = jnp.maximum(bn(y, p["bn1_gamma"], p["bn1_beta"], p["bn1_mean"], p["bn1_var"]), 0.0)
    y = jnp.einsum("oi,bit->bot", p["conv2_w"][:, :, 0], y) + p["conv2_b"][None, :, None]
    y = jnp.maximum(bn(y, p["bn2_gamma"], p["bn2_beta"], p["bn2_mean"], p["bn2_var"]), 0.0)
    y = jnp.einsum("oi,bit->bot", p["conv3_w"][:, :, 0], y) + p["conv3_b"][None, :, None]
    y = jnp.squeeze(y)
    if training:
        return jax.nn.softmax(y, axis=-1)
    return y


def init_params(key, encoder_hidden_dim, out_channels, num_classes):
    ks = jax.random.split(key, 16)
    f32 = jnp.float32
    return {
        "conv1_w": 0.02 * jax.random.normal(ks[0], (out_channels, encoder_hidden_dim, K), f32),
        "conv1_b": 0.02 * jax.random.normal(ks[1], (out_channels,), f32),
        "bn1_gamma": 1.0 + 0.1 * jax.random.normal(ks[2], (out_channels,), f32),
        "bn1_beta": 0.1 * jax.random.normal(ks[3], (out_channels,), f32),
        "bn1_mean": 0.1 * jax.random.normal(ks[4], (out_channels,), f32),
        "bn1_var": 1.0 + 0.1 * jax.random.uniform(ks[5], (out_channels,), f32),
        "conv2_w": 0.05 * jax.random.normal(ks[6], (out_channels, out_channels, 1), f32),
        "conv2_b": 0.02 * jax.random.normal(ks[7], (out_channels,), f32),
        "bn2_gamma": 1.0 + 0.1 * jax.random.normal(ks[8], (out_channels,), f32),
        "bn2_beta": 0.1 * jax.random.normal(ks[9], (out_channels,), f32),
        "bn2_mean": 0.1 * jax.random.normal(ks[10], (out_channels,), f32),
        "bn2_var": 1.0 + 0.1 * jax.random.uniform(ks[11], (out_channels,), f32),
        "conv3_w": 0.05 * jax.random.normal(ks[12], (num_classes, out_channels, 1), f32),
        "conv3_b": 0.02 * jax.random.normal(ks[13], (num_classes,), f32),
    }


if __name__ == "__main__":
    # Small shapes consistent with the module structure:
    #   batch=2, encoder seq len t=64 (>= 49 required by k=25, d=2),
    #   encoder_hidden_dim=64, out_channels=32, num_classes=2.
    B, T_SEQ, C_ENC = 2, 64, 64
    C_MID, NUM_CLASSES = 32, 2

    key = jax.random.PRNGKey(0)
    k_feat, k_param = jax.random.split(key)
    encoder_feats = jax.random.normal(k_feat, (B, T_SEQ, C_ENC), jnp.float32)
    params = init_params(k_param, C_ENC, C_MID, NUM_CLASSES)

    out = jax.block_until_ready(wav2kws_forward(encoder_feats, params, training=False))
    ref = jax.block_until_ready(reference_forward(encoder_feats, params, training=False))

    t_out = T_SEQ - DILATION * (K - 1)
    assert out.shape == ref.shape == (B, NUM_CLASSES, t_out)
    max_err = float(jnp.max(jnp.abs(out - ref)))
    # bf16 inputs/weights with f32 accumulation -> ~1e-3 worst-case deviation.
    assert jnp.allclose(out, ref, atol=2e-2, rtol=2e-2), max_err

    print("KERNEL_OK")
</pallas_src>

<mosaic_0001>
module attributes {stable_mosaic.version = 11 : i64} {
  func.func @_decoder_kernel(%arg0: i32, %arg1: memref<1600x128xbf16, #tpu.memory_space<vmem>>, %arg2: memref<32x1600xbf16, #tpu.memory_space<vmem>>, %arg3: memref<32x1xf32, #tpu.memory_space<vmem>>, %arg4: memref<32x32xbf16, #tpu.memory_space<vmem>>, %arg5: memref<32x1xf32, #tpu.memory_space<vmem>>, %arg6: memref<2x32xf32, #tpu.memory_space<vmem>>, %arg7: memref<2x1xf32, #tpu.memory_space<vmem>>, %arg8: memref<2x128xf32, #tpu.memory_space<vmem>>) attributes {dimension_semantics = [#tpu.dimension_semantics<parallel>], iteration_bounds = array<i64: 1>, scalar_prefetch = 0 : i64, scratch_operands = 0 : i64, tpu.core_type = #tpu.core_type<tc>, window_params = [{transform_indices = @transform_0, window_bounds = array<i64: 1600, 128>}, {pipeline_mode = #tpu.pipeline_mode<synchronous>, transform_indices = @transform_1, window_bounds = array<i64: 32, 1600>}, {pipeline_mode = #tpu.pipeline_mode<synchronous>, transform_indices = @transform_2, window_bounds = array<i64: 32, 1>}, {pipeline_mode = #tpu.pipeline_mode<synchronous>, transform_indices = @transform_3, window_bounds = array<i64: 32, 32>}, {pipeline_mode = #tpu.pipeline_mode<synchronous>, transform_indices = @transform_4, window_bounds = array<i64: 32, 1>}, {pipeline_mode = #tpu.pipeline_mode<synchronous>, transform_indices = @transform_5, window_bounds = array<i64: 2, 32>}, {pipeline_mode = #tpu.pipeline_mode<synchronous>, transform_indices = @transform_6, window_bounds = array<i64: 2, 1>}, {transform_indices = @transform_7, window_bounds = array<i64: 2, 128>}]} {
    %c0 = arith.constant 0 : index
    %c0_0 = arith.constant 0 : index
    %0 = vector.load %arg2[%c0, %c0_0] : memref<32x1600xbf16, #tpu.memory_space<vmem>>, vector<32x1600xbf16>
    %c0_1 = arith.constant 0 : index
    %c0_2 = arith.constant 0 : index
    %1 = vector.load %arg1[%c0_1, %c0_2] : memref<1600x128xbf16, #tpu.memory_space<vmem>>, vector<1600x128xbf16>
    %cst = arith.constant dense<0.000000e+00> : vector<32x128xf32>
    %2 = tpu.matmul %0, %1, %cst {dimension_numbers = #tpu.dot_dimension_numbers<[1], [0], [0], [1], [0, 0, 1, 1], [], []>} : vector<32x1600xbf16>, vector<1600x128xbf16>, vector<32x128xf32> -> vector<32x128xf32>
    %c0_3 = arith.constant 0 : index
    %c0_4 = arith.constant 0 : index
    %3 = vector.load %arg3[%c0_3, %c0_4] : memref<32x1xf32, #tpu.memory_space<vmem>>, vector<32x1xf32>
    %4 = vector.broadcast %3 : vector<32x1xf32> to vector<32x128xf32>
    %5 = arith.addf %2, %4 : vector<32x128xf32>
    %cst_5 = arith.constant 0.000000e+00 : f32
    %6 = vector.broadcast %cst_5 : f32 to vector<32x128xf32>
    %7 = arith.maximumf %5, %6 : vector<32x128xf32>
    %c0_6 = arith.constant 0 : index
    %c0_7 = arith.constant 0 : index
    %8 = vector.load %arg4[%c0_6, %c0_7] : memref<32x32xbf16, #tpu.memory_space<vmem>>, vector<32x32xbf16>
    %9 = arith.truncf %7 : vector<32x128xf32> to vector<32x128xbf16>
    %cst_8 = arith.constant dense<0.000000e+00> : vector<32x128xf32>
    %10 = tpu.matmul %8, %9, %cst_8 {dimension_numbers = #tpu.dot_dimension_numbers<[1], [0], [0], [1], [0, 0, 1, 1], [], []>} : vector<32x32xbf16>, vector<32x128xbf16>, vector<32x128xf32> -> vector<32x128xf32>
    %c0_9 = arith.constant 0 : index
    %c0_10 = arith.constant 0 : index
    %11 = vector.load %arg5[%c0_9, %c0_10] : memref<32x1xf32, #tpu.memory_space<vmem>>, vector<32x1xf32>
    %12 = vector.broadcast %11 : vector<32x1xf32> to vector<32x128xf32>
    %13 = arith.addf %10, %12 : vector<32x128xf32>
    %cst_11 = arith.constant 0.000000e+00 : f32
    %14 = vector.broadcast %cst_11 : f32 to vector<32x128xf32>
    %15 = arith.maximumf %13, %14 : vector<32x128xf32>
    %c0_12 = arith.constant 0 : index
    %c0_13 = arith.constant 0 : index
    %16 = vector.load %arg6[%c0_12, %c0_13] : memref<2x32xf32, #tpu.memory_space<vmem>>, vector<2x32xf32>
    %cst_14 = arith.constant dense<0.000000e+00> : vector<2x128xf32>
    %17 = tpu.matmul %16, %15, %cst_14 {dimension_numbers = #tpu.dot_dimension_numbers<[1], [0], [0], [1], [0, 0, 1, 1], [], []>} : vector<2x32xf32>, vector<32x128xf32>, vector<2x128xf32> -> vector<2x128xf32>
    %c0_15 = arith.constant 0 : index
    %c0_16 = arith.constant 0 : index
    %18 = vector.load %arg7[%c0_15, %c0_16] : memref<2x1xf32, #tpu.memory_space<vmem>>, vector<2x1xf32>
    %19 = vector.broadcast %18 : vector<2x1xf32> to vector<2x128xf32>
    %20 = arith.addf %17, %19 : vector<2x128xf32>
    %c0_17 = arith.constant 0 : index
    %c0_18 = arith.constant 0 : index
    %21 = vector.load %arg8[%c0_17, %c0_18] : memref<2x128xf32, #tpu.memory_space<vmem>>, vector<2x128xf32>
    tpu.vector_store %arg8[%c0_17, %c0_18], %20 {strides = array<i32>} : memref<2x128xf32, #tpu.memory_space<vmem>>, vector<2x128xf32>,
    return
  }
  func.func @transform_0(%arg0: i32) -> (i32, i32) {
    %c0_i32 = arith.constant 0 : i32
    %c0_i32_0 = arith.constant 0 : i32
    return %c0_i32, %arg0 : i32, i32
  }
  func.func @transform_1(%arg0: i32) -> (i32, i32) {
    %c0_i32 = arith.constant 0 : i32
    %c0_i32_0 = arith.constant 0 : i32
    %c0_i32_1 = arith.constant 0 : i32
    return %c0_i32, %c0_i32_0 : i32, i32
  }
  func.func @transform_2(%arg0: i32) -> (i32, i32) {
    %c0_i32 = arith.constant 0 : i32
    %c0_i32_0 = arith.constant 0 : i32
    %c0_i32_1 = arith.constant 0 : i32
    return %c0_i32, %c0_i32_0 : i32, i32
  }
  func.func @transform_3(%arg0: i32) -> (i32, i32) {
    %c0_i32 = arith.constant 0 : i32
    %c0_i32_0 = arith.constant 0 : i32
    %c0_i32_1 = arith.constant 0 : i32
    return %c0_i32, %c0_i32_0 : i32, i32
  }
  func.func @transform_4(%arg0: i32) -> (i32, i32) {
    %c0_i32 = arith.constant 0 : i32
    %c0_i32_0 = arith.constant 0 : i32
    %c0_i32_1 = arith.constant 0 : i32
    return %c0_i32, %c0_i32_0 : i32, i32
  }
  func.func @transform_5(%arg0: i32) -> (i32, i32) {
    %c0_i32 = arith.constant 0 : i32
    %c0_i32_0 = arith.constant 0 : i32
    %c0_i32_1 = arith.constant 0 : i32
    return %c0_i32, %c0_i32_0 : i32, i32
  }
  func.func @transform_6(%arg0: i32) -> (i32, i32) {
    %c0_i32 = arith.constant 0 : i32
    %c0_i32_0 = arith.constant 0 : i32
    %c0_i32_1 = arith.constant 0 : i32
    return %c0_i32, %c0_i32_0 : i32, i32
  }
  func.func @transform_7(%arg0: i32) -> (i32, i32) {
    %c0_i32 = arith.constant 0 : i32
    %c0_i32_0 = arith.constant 0 : i32
    return %c0_i32, %arg0 : i32, i32
  }
}

</mosaic_0001>

<bundles_post_ra>
// kernel: tpu_custom_call.1
= control target key start
LH: loop header
LB: loop body
LE: loop exit
PB: predicated region body
PF: predicated region fallthrough
CT: control target
= control target key end

     0   :  { %12 = vsyncpa [#allocation3], 0  ;;  %s2255_s0 = inlined_call_operand.hbm [shape: bf16[1600,128], index: 0, kind: input, shape index: {}]   ;;  %s2256_s1 = inlined_call_operand.hbm [shape: bf16[32,1600], index: 1, kind: input, shape index: {}]   ;;  %s2257_s2 = inlined_call_operand.vmem [shape: f32[32,1], index: 2, kind: input, shape index: {}]   ;;  %s2258_s3 = inlined_call_operand.vmem [shape: bf16[32,32], index: 3, kind: input, shape index: {}]   ;;  %s2259_s4 = inlined_call_operand.vmem [shape: f32[32,1], index: 4, kind: input, shape index: {}]   ;;  %s2260_s5 = inlined_call_operand.vmem [shape: f32[2,32], index: 5, kind: input, shape index: {}]   ;;  %s2261_s6 = inlined_call_operand.vmem [shape: f32[2,1], index: 6, kind: input, shape index: {}]   ;;  %s2262_s7 = inlined_call_operand.hbm [shape: f32[2,128], index: 7, kind: output, shape index: {}]  }
   0x1   :  { %13 = vsyncpa [#allocation6], 0 }
   0x2   :  { %14 = vsyncpa [#allocation4], 0  ;;  %s19_s26 = sshll.u32 %s2255_s0, 4  ;;  %s2159_s27 = smov [#allocation2]   ;;  %s20_s26 = int_to_ptr.hbm [resolvable:$true] %s19_s26 }
   0x3   :  { %s21_s28 = sshll.u32 %s2159_s27, 4  ;;  %s32_s8 = sshll.u32 %s2256_s1, 4  ;;  %s22_s28 = int_to_ptr.vmem [resolvable:$true] %s21_s28  ;;  %s33_s8 = int_to_ptr.hbm [resolvable:$true] %s32_s8 }
   0x4   :  { %s2160_s9 = smov 64   ;;  %s2161_s10 = smov 4  }
   0x5   :  { %27 = dma.hbm_to_vmem [thread:$0]  %s20_s26, 12800, %s22_s28, [#allocation3], %s2160_s9, %s2160_s9, %s2161_s10  }
   0x6   :  { %s2162_s11 = smov [#allocation5]   ;;  %s2163_s13 = smov 832  }
   0x7   :  { %s34_s12 = sshll.u32 %s2162_s11, 4  ;;  %s2164_s14 = smov 52   ;;  %s35_s12 = int_to_ptr.vmem [resolvable:$true] %s34_s12 }
   0x8   :  { %40 = dma.hbm_to_vmem [thread:$0]  %s33_s8, 3328, %s35_s12, [#allocation6], %s2163_s13, %s2163_s13, %s2164_s14  }
   0x9   :  { %2153 = dma.done.wait [#allocation3], 12800  }
   0xa   :  { %2154 = vsyncadd [#allocation3], 4294954496 }
   0xb   :  { %2155 = dma.done.wait [#allocation6], 3328  }
   0xc   :  { %2156 = vsyncadd [#allocation6], 4294963968  ;;  %v1969_v0 = vld [vmem:[#allocation2 + $0x38] sm:$0xff]  ;;  %v1968_v4 = vld [vmem:[#allocation2 + $0x30] sm:$0xff]  ;;  %v2165_v16 = vmov 0   ;;  %vm1042_vm0 = vcmask 523264  }
   0xd   :  { %v1985_v1 = vld [vmem:[#allocation2 + $0xb8] sm:$0xff]  ;;  %1049 = vmatpush.bf16.msra.mxu0 %v1969_v0  ;;  %v1984_v5 = vld [vmem:[#allocation2 + $0xb0] sm:$0xff]  ;;  %v1967_v8 = vld [vmem:[#allocation2 + $0x28] sm:$0xff]  ;;  %2079 = vset.pattern.permute.xlu1 %v2165_v16  ;;  %vm1340_vm1 = vcmask 261120   ;;  %s2166_s10 = smov [#allocation7]   ;;  %s1408_s14 = sshll.u32 %s2262_s7, 4  ;;  %s1409_s14 = int_to_ptr.hbm [resolvable:$true] %s1408_s14 }
   0xe   :  { %v1993_v2 = vld [vmem:[#allocation2 + $0xf8] sm:$0xff]  ;;  %1087 = vmatpush.bf16.msra.mxu2 %v1985_v1  ;;  %v1992_v6 = vld [vmem:[#allocation2 + $0xf0] sm:$0xff]  ;;  %v1983_v9 = vld [vmem:[#allocation2 + $0xa8] sm:$0xff]  ;;  %2078 = vset.pattern.permute.xlu0 %v2165_v16  ;;  %s1406_s11 = sshll.u32 %s2166_s10, 4  ;;  %s1407_s11 = int_to_ptr.vmem [resolvable:$true] %s1406_s11 }
   0xf   :  { %v1977_v3 = vld [vmem:[#allocation2 + $0x78] sm:$0xff]  ;;  %1106 = vmatpush.bf16.msra.mxu3 %v1993_v2  ;;  %v1976_v7 = vld [vmem:[#allocation2 + $0x70] sm:$0xff]  ;;  %v1991_v10 = vld [vmem:[#allocation2 + $0xe8] sm:$0xff]  ;;  %2080 = vset.pattern.permute.xlu2 %v2165_v16 }
  0x10   :  { %1068 = vmatpush.bf16.msra.mxu1 %v1977_v3  ;;  %v1975_v11 = vld [vmem:[#allocation2 + $0x68] sm:$0xff]  ;;  %v1966_v12 = vld [vmem:[#allocation2 + $0x20] sm:$0xff]  ;;  %v1965_v17 = vld [vmem:[#allocation2 + $0x18] sm:$0xff] }
  0x11   :  { %1050 = vmatpush.bf16.msra.mxu0 %v1968_v4  ;;  %v1982_v13 = vld [vmem:[#allocation2 + $0xa0] sm:$0xff]  ;;  %v1981_v18 = vld [vmem:[#allocation2 + $0x98] sm:$0xff]  ;;  %v1964_v22 = vld [vmem:[#allocation2 + $0x10] sm:$0xff] }
  0x12   :  { %1088 = vmatpush.bf16.msra.mxu2 %v1984_v5  ;;  %v1990_v14 = vld [vmem:[#allocation2 + $0xe0] sm:$0xff]  ;;  %v1989_v19 = vld [vmem:[#allocation2 + $0xd8] sm:$0xff]  ;;  %v1980_v23 = vld [vmem:[#allocation2 + $0x90] sm:$0xff] }
  0x13   :  { %1107 = vmatpush.bf16.msra.mxu3 %v1992_v6  ;;  %v1974_v15 = vld [vmem:[#allocation2 + $0x60] sm:$0xff]  ;;  %v1973_v20 = vld [vmem:[#allocation2 + $0x58] sm:$0xff]  ;;  %v1988_v24 = vld [vmem:[#allocation2 + $0xd0] sm:$0xff] }
  0x14   :  { %1069 = vmatpush.bf16.msra.mxu1 %v1976_v7  ;;  %v288_v21 = vld [vmem:[%s2257_s2] sm:$0xff]  ;;  %v1972_v25 = vld [vmem:[#allocation2 + $0x50] sm:$0xff]  ;;  %v1963_v26 = vld [vmem:[#allocation2 + $0x8] sm:$0xff] }
  0x15   :  { %1051 = vmatpush.bf16.msra.mxu0 %v1967_v8  ;;  %294 = vperm.xlu1 %2079, %v288_v21   ;;  %v1979_v27 = vld [vmem:[#allocation2 + $0x88] sm:$0xff]  ;;  %v1962_v30 = vld [vmem:[#allocation2] sm:$0xff]  ;;  %v1942_v35 = vld [vmem:[#allocation5 + $0x30] sm:$0xf0] }
  0x16   :  { %1089 = vmatpush.bf16.msra.mxu2 %v1983_v9  ;;  %v1987_v28 = vld [vmem:[#allocation2 + $0xc8] sm:$0xff]  ;;  %v1978_v31 = vld [vmem:[#allocation2 + $0x80] sm:$0xff]  ;;  %v1943_v38 = vld [vmem:[#allocation5 + $0x38] sm:$0xf0] }
  0x17   :  { %1108 = vmatpush.bf16.msra.mxu3 %v1991_v10  ;;  %v1971_v29 = vld [vmem:[#allocation2 + $0x48] sm:$0xff]  ;;  %v1421_v32 = vld [vmem:[#allocation5] sm:$0xf]  ;;  %v1936_v41 = vld [vmem:[#allocation5 + $0x4] sm:$0xf] }
  0x18   :  { %1070 = vmatpush.bf16.msra.mxu1 %v1975_v11  ;;  %v1986_v33 = vld [vmem:[#allocation2 + $0xc0] sm:$0xff]  ;;  %v1429_v36 = vld [vmem:[#allocation5 + $0x8] sm:$0xf]  ;;  %v1937_v39 = vld [vmem:[#allocation5 + $0xc] sm:$0xf]  ;;  %v1422_v46 = vor.u32 %v1942_v35, %v1421_v32 }
  0x19   :  { %1052 = vmatpush.bf16.msra.mxu0 %v1966_v12  ;;  %v1970_v34 = vld [vmem:[#allocation2 + $0x40] sm:$0xff]  ;;  %v289_v37 = vld [vmem:[%s2257_s2 + $0x8] sm:$0xff]  ;;  %v1423_v42 = vld [vmem:[#allocation5 + $0x34] sm:$0xf0]  ;;  %v1430_v47 = vor.u32 %v1943_v38, %v1429_v36 }
  0x1a   :  { %1090 = vmatpush.bf16.msra.mxu2 %v1982_v13  ;;  %v1431_v40 = vld [vmem:[#allocation5 + $0x3c] sm:$0xf0]  ;;  %v290_v43 = vld [vmem:[%s2257_s2 + $0x10] sm:$0xff]  ;;  %v2001_v44 = vld [vmem:[#allocation2 + $0x138] sm:$0xff]  ;;  %v1426_v49 = vor.u32 %v1936_v41, %v1423_v42 }
  0x1b   :  { %1109 = vmatpush.bf16.msra.mxu3 %v1990_v14  ;;  %v2017_v45 = vld [vmem:[#allocation2 + $0x1b8] sm:$0xff]  ;;  %304 = vperm.xlu0 %2078, %v290_v43   ;;  %v1434_v48 = vor.u32 %v1937_v39, %v1431_v40  ;;  %v2000_v52 = vld [vmem:[#allocation2 + $0x130] sm:$0xff]  ;;  %v1999_v57 = vld [vmem:[#allocation2 + $0x128] sm:$0xff] }
  0x1c   :  { %1071 = vmatpush.bf16.msra.mxu1 %v1974_v15  ;;  %v2025_v50 = vld [vmem:[#allocation2 + $0x1f8] sm:$0xff]  ;;  %v2016_v53 = vld [vmem:[#allocation2 + $0x1b0] sm:$0xff]  ;;  %v2015_v58 = vld [vmem:[#allocation2 + $0x1a8] sm:$0xff] }
  0x1d   :  { %1053 = vmatpush.bf16.msra.mxu0 %v1965_v17  ;;  %299 = vperm.xlu1 %2079, %v289_v37   ;;  %v2009_v51 = vld [vmem:[#allocation2 + $0x178] sm:$0xff]  ;;  %v2024_v54 = vld [vmem:[#allocation2 + $0x1f0] sm:$0xff]  ;;  %v2023_v59 = vld [vmem:[#allocation2 + $0x1e8] sm:$0xff] }
  0x1e   :  { %1091 = vmatpush.bf16.msra.mxu2 %v1981_v18  ;;  %v2008_v55 = vld [vmem:[#allocation2 + $0x170] sm:$0xff]  ;;  %v291_v56 = vld [vmem:[%s2257_s2 + $0x18] sm:$0xff]  ;;  %v2007_v60 = vld [vmem:[#allocation2 + $0x168] sm:$0xff] }
  0x1f   :  { %1110 = vmatpush.bf16.msra.mxu3 %v1989_v19  ;;  %v1998_v61 = vld [vmem:[#allocation2 + $0x120] sm:$0xff]  ;;  %v1473_v1 = vld [vmem:[#allocation5 + $0x68] sm:$0xf]  ;;  %v1955_v2 = vld [vmem:[#allocation5 + $0x98] sm:$0xf0] }
  0x20   :  { %1072 = vmatpush.bf16.msra.mxu1 %v1973_v20  ;;  %v2014_v62 = vld [vmem:[#allocation2 + $0x1a0] sm:$0xff]  ;;  %v1481_v3 = vld [vmem:[#allocation5 + $0x70] sm:$0xf]  ;;  %v1950_v5 = vld [vmem:[#allocation5 + $0x74] sm:$0xf]  ;;  %v1474_v11 = vor.u32 %v1955_v2, %v1473_v1 }
  0x21   :  { %1054 = vmatpush.bf16.msra.mxu0 %v1964_v22  ;;  %v2022_v63 = vld [vmem:[#allocation2 + $0x1e0] sm:$0xff]  ;;  %v1483_v6 = vld [vmem:[#allocation5 + $0xa4] sm:$0xf0]  ;;  %v1949_v7 = vld [vmem:[#allocation5 + $0x6c] sm:$0xf] }
  0x22   :  { %1092 = vmatpush.bf16.msra.mxu2 %v1980_v23  ;;  %v2006_v0 = vld [vmem:[#allocation2 + $0x160] sm:$0xff]  ;;  %v1997_v9 = vld [vmem:[#allocation2 + $0x118] sm:$0xff]  ;;  %v1486_v13 = vor.u32 %v1950_v5, %v1483_v6  ;;  %v1996_v17 = vld [vmem:[#allocation2 + $0x110] sm:$0xff] }
  0x23   :  { %1111 = vmatpush.bf16.msra.mxu3 %v1988_v24  ;;  %309 = vperm.xlu0 %2078, %v291_v56   ;;  %v1956_v4 = vld [vmem:[#allocation5 + $0xa0] sm:$0xf0]  ;;  %v1475_v8 = vld [vmem:[#allocation5 + $0x9c] sm:$0xf0]  ;;  %v2013_v10 = vld [vmem:[#allocation2 + $0x198] sm:$0xff] }
  0x24   :  { %1073 = vmatpush.bf16.msra.mxu1 %v1972_v25  ;;  %v1482_v12 = vor.u32 %v1956_v4, %v1481_v3  ;;  %v1478_v14 = vor.u32 %v1949_v7, %v1475_v8  ;;  %v2021_v15 = vld [vmem:[#allocation2 + $0x1d8] sm:$0xff]  ;;  %v2012_v18 = vld [vmem:[#allocation2 + $0x190] sm:$0xff]  ;;  %v1995_v21 = vld [vmem:[#allocation2 + $0x108] sm:$0xff] }
  0x25   :  { %1055 = vmatpush.bf16.msra.mxu0 %v1963_v26  ;;  %v2005_v16 = vld [vmem:[#allocation2 + $0x158] sm:$0xff]  ;;  %v2020_v19 = vld [vmem:[#allocation2 + $0x1d0] sm:$0xff]  ;;  %v2011_v22 = vld [vmem:[#allocation2 + $0x188] sm:$0xff] }
  0x26   :  { %1093 = vmatpush.bf16.msra.mxu2 %v1979_v27  ;;  %v2004_v20 = vld [vmem:[#allocation2 + $0x150] sm:$0xff]  ;;  %v2019_v23 = vld [vmem:[#allocation2 + $0x1c8] sm:$0xff]  ;;  %v1994_v25 = vld [vmem:[#allocation2 + $0x100] sm:$0xff] }
  0x27   :  { %1112 = vmatpush.bf16.msra.mxu3 %v1987_v28  ;;  %v2003_v24 = vld [vmem:[#allocation2 + $0x148] sm:$0xff]  ;;  %v2010_v26 = vld [vmem:[#allocation2 + $0x180] sm:$0xff]  ;;  %v1437_v27 = vld [vmem:[#allocation5 + $0x10] sm:$0xf] }
  0x28   :  { %1074 = vmatpush.bf16.msra.mxu1 %v1971_v29  ;;  %v2018_v28 = vld [vmem:[#allocation2 + $0x1c0] sm:$0xff]  ;;  %v2049_v32 = vld [vmem:[#allocation2 + $0x2b8] sm:$0xff]  ;;  %v1447_v36 = vld [vmem:[#allocation5 + $0x4c] sm:$0xf0] }
  0x29   :  { %1056 = vmatpush.bf16.msra.mxu0 %v1962_v30  ;;  %v2002_v29 = vld [vmem:[#allocation2 + $0x140] sm:$0xff]  ;;  %v1939_v35 = vld [vmem:[#allocation5 + $0x1c] sm:$0xf]  ;;  %v1938_v37 = vld [vmem:[#allocation5 + $0x14] sm:$0xf] }
  0x2a   :  { %1094 = vmatpush.bf16.msra.mxu2 %v1978_v31  ;;  %v1944_v30 = vld [vmem:[#allocation5 + $0x40] sm:$0xf0]  ;;  %v2033_v31 = vld [vmem:[#allocation2 + $0x238] sm:$0xff]  ;;  %v1439_v38 = vld [vmem:[#allocation5 + $0x44] sm:$0xf0]  ;;  %v1450_v43 = vor.u32 %v1939_v35, %v1447_v36 }
  0x2b   :  { %1113 = vmatpush.bf16.msra.mxu3 %v1986_v33  ;;  %v1445_v33 = vld [vmem:[#allocation5 + $0x18] sm:$0xf]  ;;  %v1438_v41 = vor.u32 %v1944_v30, %v1437_v27  ;;  %v2038_v56 = vld [vmem:[#allocation2 + $0x260] sm:$0xff]  ;;  %v1951_v1 = vld [vmem:[#allocation5 + $0x7c] sm:$0xf] }
  0x2c   :  { %1075 = vmatpush.bf16.msra.mxu1 %v1970_v34  ;;  %1057 = vmatmul.bf16.vlgmr.msra.gmra.mxu0 %v1422_v46  ;;  %v1945_v34 = vld [vmem:[#allocation5 + $0x48] sm:$0xf0]  ;;  %v2057_v39 = vld [vmem:[#allocation2 + $0x2f8] sm:$0xff]  ;;  %v2048_v46 = vld [vmem:[#allocation2 + $0x2b0] sm:$0xff] }
  0x2d   :  { %1125 = vmatpush.bf16.msrb.mxu0 %v2001_v44  ;;  %1095 = vmatmul.bf16.vlgmr.msra.gmra.mxu2 %v1430_v47  ;;  %v2041_v40 = vld [vmem:[#allocation2 + $0x278] sm:$0xff]  ;;  %v1446_v42 = vor.u32 %v1945_v34, %v1445_v33  ;;  %v1442_v44 = vor.u32 %v1938_v37, %v1439_v38  ;;  %v2056_v47 = vld [vmem:[#allocation2 + $0x2f0] sm:$0xff]  ;;  %v1941_v27 = vld [vmem:[#allocation5 + $0x2c] sm:$0xf] }
  0x2e   :  { %1163 = vmatpush.bf16.msrb.mxu2 %v2017_v45  ;;  %1114 = vmatmul.bf16.vlgmr.msra.gmra.mxu3 %v1434_v48  ;;  %v2032_v45 = vld [vmem:[#allocation2 + $0x230] sm:$0xff]  ;;  %v2053_v3 = vld [vmem:[#allocation2 + $0x2d8] sm:$0xff]  ;;  %v1306_v35 = vld [vmem:[%s2259_s4] sm:$0xff] }
  0x2f   :  { %1076 = vmatmul.bf16.vlgmr.msra.gmra.mxu1 %v1426_v49  ;;  %1182 = vmatpush.bf16.msrb.mxu3 %v2025_v50  ;;  %v2040_v48 = vld [vmem:[#allocation2 + $0x270] sm:$0xff]  ;;  %v2031_v49 = vld [vmem:[#allocation2 + $0x228] sm:$0xff]  ;;  %v2037_v4 = vld [vmem:[#allocation2 + $0x258] sm:$0xff] }
  0x30   :  { %1144 = vmatpush.bf16.msrb.mxu1 %v2009_v51  ;;  %v2047_v50 = vld [vmem:[#allocation2 + $0x2a8] sm:$0xff]  ;;  %v1491_v2 = vld [vmem:[#allocation5 + $0xac] sm:$0xf0]  ;;  %v1455_v30 = vld [vmem:[#allocation5 + $0x54] sm:$0xf0]  ;;  %1312 = vperm.xlu1 %2079, %v1306_v35  }
  0x31   :  { %1126 = vmatpush.bf16.msrb.mxu0 %v2000_v52  ;;  %v2055_v51 = vld [vmem:[#allocation2 + $0x2e8] sm:$0xff]  ;;  %v1494_v8 = vor.u32 %v1951_v1, %v1491_v2  ;;  %v2060_v36 = vld [vmem:[#allocation2 + $0x310] sm:$0xff]  ;;  %v2058_v38 = vld [vmem:[#allocation2 + $0x300] sm:$0xff] }
  0x32   :  { %1164 = vmatpush.bf16.msrb.mxu2 %v2016_v53  ;;  %v2039_v52 = vld [vmem:[#allocation2 + $0x268] sm:$0xff]  ;;  %v2030_v53 = vld [vmem:[#allocation2 + $0x220] sm:$0xff] }
  0x33   :  { %1183 = vmatpush.bf16.msrb.mxu3 %v2024_v54  ;;  %v2046_v54 = vld [vmem:[#allocation2 + $0x2a0] sm:$0xff]  ;;  %v2059_v37 = vld [vmem:[#allocation2 + $0x308] sm:$0xff] }
  0x34   :  { %1145 = vmatpush.bf16.msrb.mxu1 %v2008_v55  ;;  %v2054_v55 = vld [vmem:[#allocation2 + $0x2e0] sm:$0xff] }
  0x35   :  { %1127 = vmatpush.bf16.msrb.mxu0 %v1999_v57  ;;  %v1489_v57 = vld [vmem:[#allocation5 + $0x78] sm:$0xf] }
  0x36   :  { %1165 = vmatpush.bf16.msrb.mxu2 %v2015_v58  ;;  %v1957_v58 = vld [vmem:[#allocation5 + $0xa8] sm:$0xf0] }
  0x37   :  { %1184 = vmatpush.bf16.msrb.mxu3 %v2023_v59  ;;  %v1497_v59 = vld [vmem:[#allocation5 + $0x80] sm:$0xf]  ;;  %v1490_v5 = vor.u32 %v1957_v58, %v1489_v57 }
  0x38   :  { %1146 = vmatpush.bf16.msrb.mxu1 %v2007_v60  ;;  %v1958_v60 = vld [vmem:[#allocation5 + $0xb0] sm:$0xf0] }
  0x39   :  { %1128 = vmatpush.bf16.msrb.mxu0 %v1998_v61  ;;  %v1952_v61 = vld [vmem:[#allocation5 + $0x84] sm:$0xf]  ;;  %v1498_v6 = vor.u32 %v1958_v60, %v1497_v59 }
  0x3a   :  { %1166 = vmatpush.bf16.msrb.mxu2 %v2014_v62  ;;  %v1499_v62 = vld [vmem:[#allocation5 + $0xb4] sm:$0xf0] }
  0x3b   :  { %1185 = vmatpush.bf16.msrb.mxu3 %v2022_v63  ;;  %v2029_v63 = vld [vmem:[#allocation2 + $0x218] sm:$0xff]  ;;  %v1502_v7 = vor.u32 %v1952_v61, %v1499_v62 }
  0x3c   :  { %1147 = vmatpush.bf16.msrb.mxu1 %v2006_v0  ;;  %1062 = vmatmul.bf16.gmra.mxu0 %v1474_v11  ;;  %v2045_v0 = vld [vmem:[#allocation2 + $0x298] sm:$0xff]  ;;  %v2052_v11 = vld [vmem:[#allocation2 + $0x2d0] sm:$0xff] }
  0x3d   :  { %1129 = vmatpush.bf16.msrb.mxu0 %v1997_v9  ;;  %1100 = vmatmul.bf16.gmra.mxu2 %v1482_v12  ;;  %v2028_v9 = vld [vmem:[#allocation2 + $0x210] sm:$0xff] }
  0x3e   :  { %1167 = vmatpush.bf16.msrb.mxu2 %v2013_v10  ;;  %1119 = vmatmul.bf16.gmra.mxu3 %v1486_v13  ;;  %v2044_v10 = vld [vmem:[#allocation2 + $0x290] sm:$0xff]  ;;  %v1307_v13 = vld [vmem:[%s2259_s4 + $0x8] sm:$0xff] }
  0x3f   :  { %1081 = vmatmul.bf16.gmra.mxu1 %v1478_v14  ;;  %1186 = vmatpush.bf16.msrb.mxu3 %v2021_v15  ;;  %v2036_v12 = vld [vmem:[#allocation2 + $0x250] sm:$0xff]  ;;  %v2027_v14 = vld [vmem:[#allocation2 + $0x208] sm:$0xff] }
  0x40   :  { %1148 = vmatpush.bf16.msrb.mxu1 %v2005_v16  ;;  %v2043_v15 = vld [vmem:[#allocation2 + $0x288] sm:$0xff]  ;;  %1317 = vperm.xlu0 %2078, %v1307_v13  }
  0x41   :  { %1130 = vmatpush.bf16.msrb.mxu0 %v1996_v17  ;;  %v2051_v16 = vld [vmem:[#allocation2 + $0x2c8] sm:$0xff] }
  0x42   :  { %1168 = vmatpush.bf16.msrb.mxu2 %v2012_v18  ;;  %v2035_v17 = vld [vmem:[#allocation2 + $0x248] sm:$0xff]  ;;  %v2026_v18 = vld [vmem:[#allocation2 + $0x200] sm:$0xff] }
  0x43   :  { %1187 = vmatpush.bf16.msrb.mxu3 %v2020_v19  ;;  %v2042_v19 = vld [vmem:[#allocation2 + $0x280] sm:$0xff] }
  0x44   :  { %1149 = vmatpush.bf16.msrb.mxu1 %v2004_v20  ;;  %v2050_v20 = vld [vmem:[#allocation2 + $0x2c0] sm:$0xff] }
  0x45   :  { %1131 = vmatpush.bf16.msrb.mxu0 %v1995_v21  ;;  %v2034_v21 = vld [vmem:[#allocation2 + $0x240] sm:$0xff] }
  0x46   :  { %1169 = vmatpush.bf16.msrb.mxu2 %v2011_v22  ;;  %v1453_v22 = vld [vmem:[#allocation5 + $0x20] sm:$0xf] }
  0x47   :  { %1188 = vmatpush.bf16.msrb.mxu3 %v2019_v23  ;;  %v1946_v23 = vld [vmem:[#allocation5 + $0x50] sm:$0xf0] }
  0x48   :  { %1150 = vmatpush.bf16.msrb.mxu1 %v2003_v24  ;;  %v2061_v24 = vld [vmem:[#allocation2 + $0x318] sm:$0xff] }
  0x49   :  { %1132 = vmatpush.bf16.msrb.mxu0 %v1994_v25  ;;  %v1461_v25 = vld [vmem:[#allocation5 + $0x28] sm:$0xf] }
  0x4a   :  { %1170 = vmatpush.bf16.msrb.mxu2 %v2010_v26  ;;  %v1947_v26 = vld [vmem:[#allocation5 + $0x58] sm:$0xf0] }
  0x4b   :  { %1189 = vmatpush.bf16.msrb.mxu3 %v2018_v28  ;;  %v1463_v28 = vld [vmem:[#allocation5 + $0x5c] sm:$0xf0] }
  0x4c   :  { %1151 = vmatpush.bf16.msrb.mxu1 %v2002_v29  ;;  %1133 = vmatmul.bf16.vlgmr.msrb.gmra.mxu0 %v1438_v41  ;;  %v1940_v29 = vld [vmem:[#allocation5 + $0x24] sm:$0xf]  ;;  %v1466_v33 = vor.u32 %v1941_v27, %v1463_v28  ;;  %v1513_v41 = vld [vmem:[#allocation5 + $0x90] sm:$0xf] }
  0x4d   :  { %1201 = vmatpush.bf16.msra.mxu0 %v2033_v31  ;;  %1171 = vmatmul.bf16.vlgmr.msrb.gmra.mxu2 %v1446_v42  ;;  %v1454_v31 = vor.u32 %v1946_v23, %v1453_v22  ;;  %v1458_v34 = vor.u32 %v1940_v29, %v1455_v30  ;;  %v1960_v42 = vld [vmem:[#allocation5 + $0xc0] sm:$0xf0] }
  0x4e   :  { %1239 = vmatpush.bf16.msra.mxu2 %v2049_v32  ;;  %1190 = vmatmul.bf16.vlgmr.msrb.gmra.mxu3 %v1450_v43  ;;  %v1462_v32 = vor.u32 %v1947_v26, %v1461_v25  ;;  %v1954_v43 = vld [vmem:[#allocation5 + $0x94] sm:$0xf] }
  0x4f   :  { %1258 = vmatpush.bf16.msra.mxu3 %v2057_v39  ;;  %1152 = vmatmul.bf16.vlgmr.msrb.gmra.mxu1 %v1442_v44  ;;  %v1505_v39 = vld [vmem:[#allocation5 + $0x88] sm:$0xf] }
  0x50   :  { %1220 = vmatpush.bf16.msra.mxu1 %v2041_v40  ;;  %v1959_v40 = vld [vmem:[#allocation5 + $0xb8] sm:$0xf0]  ;;  %v1515_v44 = vld [vmem:[#allocation5 + $0xc4] sm:$0xf0] }
  0x51   :  { %1202 = vmatpush.bf16.msra.mxu0 %v2032_v45  ;;  %v1953_v45 = vld [vmem:[#allocation5 + $0x8c] sm:$0xf] }
  0x52   :  { %1240 = vmatpush.bf16.msra.mxu2 %v2048_v46  ;;  %v1507_v46 = vld [vmem:[#allocation5 + $0xbc] sm:$0xf0] }
  0x53   :  { %1259 = vmatpush.bf16.msra.mxu3 %v2056_v47  ;;  %v1506_v47 = vor.u32 %v1959_v40, %v1505_v39 }
  0x54   :  { %1221 = vmatpush.bf16.msra.mxu1 %v2040_v48  ;;  %v1514_v48 = vor.u32 %v1960_v42, %v1513_v41 }
  0x55   :  { %1203 = vmatpush.bf16.msra.mxu0 %v2031_v49  ;;  %v1518_v49 = vor.u32 %v1954_v43, %v1515_v44 }
  0x56   :  { %1241 = vmatpush.bf16.msra.mxu2 %v2047_v50  ;;  %v1510_v50 = vor.u32 %v1953_v45, %v1507_v46 }
  0x57   :  { %1260 = vmatpush.bf16.msra.mxu3 %v2055_v51  ;;  %v1469_v51 = vld [vmem:[#allocation5 + $0x30] sm:$0xf] }
  0x58   :  { %1222 = vmatpush.bf16.msra.mxu1 %v2039_v52  ;;  %v1948_v52 = vld [vmem:[#allocation5 + $0x60] sm:$0xf0] }
  0x59   :  { %1204 = vmatpush.bf16.msra.mxu0 %v2030_v53  ;;  %v1521_v53 = vld [vmem:[#allocation5 + $0x98] sm:$0xf] }
  0x5a   :  { %1242 = vmatpush.bf16.msra.mxu2 %v2046_v54  ;;  %v1961_v54 = vld [vmem:[#allocation5 + $0xc8] sm:$0xf0] }
  0x5b   :  { %1261 = vmatpush.bf16.msra.mxu3 %v2054_v55  ;;  %v1470_v55 = vor.u32 %v1948_v52, %v1469_v51 }
  0x5c   :  { %1223 = vmatpush.bf16.msra.mxu1 %v2038_v56  ;;  %1138 = vmatmul.bf16.gmra.mxu0 %v1490_v5  ;;  %v1522_v56 = vor.u32 %v1961_v54, %v1521_v53 }
  0x5d   :  { %1205 = vmatpush.bf16.msra.mxu0 %v2029_v63  ;;  %1176 = vmatmul.bf16.gmra.mxu2 %v1498_v6 }
  0x5e   :  { %1243 = vmatpush.bf16.msra.mxu2 %v2045_v0  ;;  %1195 = vmatmul.bf16.gmra.mxu3 %v1502_v7 }
  0x5f   :  { %1262 = vmatpush.bf16.msra.mxu3 %v2053_v3  ;;  %1157 = vmatmul.bf16.gmra.mxu1 %v1494_v8 }
  0x60   :  { %1224 = vmatpush.bf16.msra.mxu1 %v2037_v4 }
  0x61   :  { %1206 = vmatpush.bf16.msra.mxu0 %v2028_v9 }
  0x62   :  { %1244 = vmatpush.bf16.msra.mxu2 %v2044_v10 }
  0x63   :  { %1263 = vmatpush.bf16.msra.mxu3 %v2052_v11 }
  0x64   :  { %1225 = vmatpush.bf16.msra.mxu1 %v2036_v12 }
  0x65   :  { %1207 = vmatpush.bf16.msra.mxu0 %v2027_v14 }
  0x66   :  { %1245 = vmatpush.bf16.msra.mxu2 %v2043_v15 }
  0x67   :  { %1264 = vmatpush.bf16.msra.mxu3 %v2051_v16 }
  0x68   :  { %1226 = vmatpush.bf16.msra.mxu1 %v2035_v17 }
  0x69   :  { %1208 = vmatpush.bf16.msra.mxu0 %v2026_v18 }
  0x6a   :  { %1246 = vmatpush.bf16.msra.mxu2 %v2042_v19 }
  0x6b   :  { %1265 = vmatpush.bf16.msra.mxu3 %v2050_v20 }
  0x6c   :  { %1227 = vmatpush.bf16.msra.mxu1 %v2034_v21  ;;  %1209 = vmatmul.bf16.vlgmr.msra.gmra.mxu0 %v1454_v31 }
  0x6d   :  { %1281 = vmatpush.bf16.msrb.mxu0 %v2061_v24  ;;  %1247 = vmatmul.bf16.vlgmr.msra.gmra.mxu2 %v1462_v32 }
  0x6e   :  { %1266 = vmatmul.bf16.vlgmr.msra.gmra.mxu3 %v1466_v33 }
  0x6f   :  { %2064 = vmatpush.bf16.msrb.mxu3 %v2061_v24  ;;  %1228 = vmatmul.bf16.vlgmr.msra.gmra.mxu1 %v1458_v34 }
  0x71   :  { %1282 = vmatpush.bf16.msrb.mxu0 %v2060_v36 }
  0x73   :  { %2065 = vmatpush.bf16.msrb.mxu3 %v2060_v36 }
  0x75   :  { %1283 = vmatpush.bf16.msrb.mxu0 %v2059_v37 }
  0x77   :  { %2066 = vmatpush.bf16.msrb.mxu3 %v2059_v37 }
  0x79   :  { %1284 = vmatpush.bf16.msrb.mxu0 %v2058_v38 }
  0x7b   :  { %2067 = vmatpush.bf16.msrb.mxu3 %v2058_v38 }
  0x7c   :  { %1214 = vmatmul.bf16.gmra.mxu0 %v1506_v47 }
  0x7d   :  { %1252 = vmatmul.bf16.gmra.mxu2 %v1514_v48 }
  0x7e   :  { %1271 = vmatmul.bf16.gmra.mxu3 %v1518_v49 }
  0x7f   :  { %1233 = vmatmul.bf16.gmra.mxu1 %v1510_v50 }
  0x87   :  { %v295_v57 = vpop.permute.xlu1 %294 }
  0x8c   :  { %1923 = vmatmul.msk.bf16.vlgmr.msrb.gmra.mxu0 %vm1042_vm0, %v1470_v55 }
  0x8d   :  { %v305_v36 = vpop.permute.xlu0 %304 }
  0x8e   :  { %1924 = vmatmul.msk.bf16.vlgmr.msrb.gmra.mxu3 %vm1042_vm0, %v1522_v56 }
  0x8f   :  { %v300_v63 = vpop.permute.xlu1 %299 }
  0x95   :  { %v310_v41 = vpop.permute.xlu0 %309 }
  0xa9   :  { %v1058_v58 = vpop.f32.mrf.mxu0 }
  0xaa   :  { %v1059_v59 = vadd.f32 %v1058_v58, %v295_v57 }
  0xac   :  { %v1077_v60 = vpop.f32.mrf.mxu1 }
  0xad   :  { %v1078_v61 = vadd.f32 %v1077_v60, %v1059_v59 }
  0xb0   :  { %v1096_v62 = vpop.f32.mrf.mxu2 }
  0xb1   :  { %v1097_v0 = vadd.f32 %v1096_v62, %v1078_v61  ;;  %v1115_v1 = vpop.f32.mrf.mxu3  ;;  %v1060_v2 = vpop.f32.mrf.mxu0 }
  0xb2   :  { %v1061_v4 = vadd.f32 %v1060_v2, %v300_v63 }
  0xb3   :  { %v1116_v3 = vadd.f32 %v1115_v1, %v1097_v0 }
  0xb4   :  { %v1079_v5 = vpop.f32.mrf.mxu1 }
  0xb5   :  { %v1080_v6 = vadd.f32 %v1079_v5, %v1061_v4 }
  0xb8   :  { %v1098_v7 = vpop.f32.mrf.mxu2 }
  0xb9   :  { %v1099_v8 = vadd.f32 %v1098_v7, %v1080_v6  ;;  %v1117_v9 = vpop.f32.mrf.mxu3  ;;  %v1063_v10 = vpop.f32.mrf.mxu0 }
  0xba   :  { %v1064_v44 = vadd.f32 %v1063_v10, %v305_v36  ;;  %v1371_v36 = vld [vmem:[%s2261_s6] sm:$0x3] }
  0xbb   :  { %v1118_v11 = vadd.f32 %v1117_v9, %v1099_v8  ;;  %v1309_v9 = vld [vmem:[%s2259_s4 + $0x18] sm:$0xff] }
  0xbc   :  { %v1082_v12 = vpop.f32.mrf.mxu1  ;;  %1327 = vperm.xlu2 %2080, %v1309_v9  }
  0xbd   :  { %v1083_v48 = vadd.f32 %v1082_v12, %v1064_v44 }
  0xc0   :  { %v1101_v13 = vpop.f32.mrf.mxu2 }
  0xc1   :  { %v1120_v14 = vpop.f32.mrf.mxu3  ;;  %v1065_v15 = vpop.f32.mrf.mxu0  ;;  %v1102_v51 = vadd.f32 %v1101_v13, %v1083_v48 }
  0xc2   :  { %v1066_v47 = vadd.f32 %v1065_v15, %v310_v41 }
  0xc3   :  { %v1121_v57 = vadd.f32 %v1120_v14, %v1102_v51 }
  0xc4   :  { %v1084_v16 = vpop.f32.mrf.mxu1 }
  0xc5   :  { %v1085_v49 = vadd.f32 %v1084_v16, %v1066_v47  ;;  %v2063_v47 = vld [vmem:[%s2258_s3 + $0x8] sm:$0xff] }
  0xc8   :  { %v1103_v17 = vpop.f32.mrf.mxu2 }
  0xc9   :  { %v1122_v18 = vpop.f32.mrf.mxu3  ;;  %v1134_v19 = vpop.f32.mrf.mxu0  ;;  %v1104_v55 = vadd.f32 %v1103_v17, %v1085_v49 }
  0xca   :  { %v1135_v20 = vadd.f32 %v1134_v19, %v1116_v3 }
  0xcb   :  { %v1123_v59 = vadd.f32 %v1122_v18, %v1104_v55 }
  0xcc   :  { %v1153_v21 = vpop.f32.mrf.mxu1 }
  0xcd   :  { %v1154_v22 = vadd.f32 %v1153_v21, %v1135_v20  ;;  %v1308_v20 = vld [vmem:[%s2259_s4 + $0x10] sm:$0xff] }
  0xce   :  { %1322 = vperm.xlu2 %2080, %v1308_v20  }
  0xd0   :  { %v1172_v23 = vpop.f32.mrf.mxu2 }
  0xd1   :  { %v1173_v24 = vadd.f32 %v1172_v23, %v1154_v22  ;;  %v1191_v25 = vpop.f32.mrf.mxu3  ;;  %v1136_v26 = vpop.f32.mrf.mxu0 }
  0xd2   :  { %v1137_v53 = vadd.f32 %v1136_v26, %v1118_v11 }
  0xd3   :  { %v1192_v27 = vadd.f32 %v1191_v25, %v1173_v24 }
  0xd4   :  { %v1155_v28 = vpop.f32.mrf.mxu1 }
  0xd5   :  { %v1156_v58 = vadd.f32 %v1155_v28, %v1137_v53 }
  0xd6   :  { %1374 = vperm.xlu2 %2080, %v1371_v36  }
  0xd8   :  { %v1174_v29 = vpop.f32.mrf.mxu2 }
  0xd9   :  { %v1193_v30 = vpop.f32.mrf.mxu3  ;;  %v1139_v31 = vpop.f32.mrf.mxu0  ;;  %v1175_v61 = vadd.f32 %v1174_v29, %v1156_v58 }
  0xda   :  { %v1140_v60 = vadd.f32 %v1139_v31, %v1121_v57 }
  0xdb   :  { %v1194_v2 = vadd.f32 %v1193_v30, %v1175_v61 }
  0xdc   :  { %v1158_v32 = vpop.f32.mrf.mxu1 }
  0xdd   :  { %v1159_v1 = vadd.f32 %v1158_v32, %v1140_v60 }
  0xe0   :  { %v1177_v33 = vpop.f32.mrf.mxu2 }
  0xe1   :  { %v1196_v34 = vpop.f32.mrf.mxu3  ;;  %v1141_v35 = vpop.f32.mrf.mxu0  ;;  %v1178_v5 = vadd.f32 %v1177_v33, %v1159_v1 }
  0xe2   :  { %v1142_v63 = vadd.f32 %v1141_v35, %v1123_v59  ;;  %v1313_v59 = vpop.permute.xlu1 %1312 }
  0xe3   :  { %v1197_v13 = vadd.f32 %v1196_v34, %v1178_v5 }
  0xe4   :  { %v1160_v37 = vpop.f32.mrf.mxu1 }
  0xe5   :  { %v1161_v6 = vadd.f32 %v1160_v37, %v1142_v63 }
  0xe8   :  { %v1179_v38 = vpop.f32.mrf.mxu2 }
  0xe9   :  { %v1198_v39 = vpop.f32.mrf.mxu3  ;;  %v1210_v40 = vpop.f32.mrf.mxu0  ;;  %v1180_v10 = vadd.f32 %v1179_v38, %v1161_v6 }
  0xea   :  { %v1211_v3 = vadd.f32 %v1210_v40, %v1192_v27 }
  0xeb   :  { %v1199_v17 = vadd.f32 %v1198_v39, %v1180_v10 }
  0xec   :  { %v1229_v42 = vpop.f32.mrf.mxu1 }
  0xed   :  { %v1230_v11 = vadd.f32 %v1229_v42, %v1211_v3 }
  0xf0   :  { %v1248_v46 = vpop.f32.mrf.mxu2 }
  0xf1   :  { %v1267_v43 = vpop.f32.mrf.mxu3  ;;  %v1212_v45 = vpop.f32.mrf.mxu0  ;;  %v1249_v15 = vadd.f32 %v1248_v46, %v1230_v11  ;;  %v2062_v46 = vld [vmem:[%s2258_s3] sm:$0xff] }
  0xf2   :  { %v1213_v7 = vadd.f32 %v1212_v45, %v1194_v2 }
  0xf3   :  { %v1268_v22 = vadd.f32 %v1267_v43, %v1249_v15 }
  0xf4   :  { %v1231_v54 = vpop.f32.mrf.mxu1 }
  0xf5   :  { %v1232_v16 = vadd.f32 %v1231_v54, %v1213_v7 }
  0xf8   :  { %v1250_v56 = vpop.f32.mrf.mxu2 }
  0xf9   :  { %v1269_v50 = vpop.f32.mrf.mxu3  ;;  %v1215_v52 = vpop.f32.mrf.mxu0  ;;  %v1251_v19 = vadd.f32 %v1250_v56, %v1232_v16 }
  0xfa   :  { %v1216_v18 = vadd.f32 %v1215_v52, %v1197_v13  ;;  %v1318_v56 = vpop.permute.xlu0 %1317 }
  0xfb   :  { %v1270_v25 = vadd.f32 %v1269_v50, %v1251_v19 }
  0xfc   :  { %v1234_v4 = vpop.f32.mrf.mxu1 }
  0xfd   :  { %v1235_v24 = vadd.f32 %v1234_v4, %v1216_v18 }
 0x100   :  { %v1253_v8 = vpop.f32.mrf.mxu2 }
 0x101   :  { %v1272_v62 = vpop.f32.mrf.mxu3  ;;  %v1217_v0 = vpop.f32.mrf.mxu0  ;;  %v1254_v29 = vadd.f32 %v1253_v8, %v1235_v24 }
 0x102   :  { %v1218_v21 = vadd.f32 %v1217_v0, %v1199_v17  ;;  %v1370_v0 = vld [vmem:[%s2260_s5] sm:$0x3] }
 0x103   :  { %v1273_v37 = vadd.f32 %v1272_v62, %v1254_v29 }
 0x104   :  { %v1236_v23 = vpop.f32.mrf.mxu1 }
 0x105   :  { %v1237_v30 = vadd.f32 %v1236_v23, %v1218_v21 }
 0x108   :  { %v1255_v26 = vpop.f32.mrf.mxu2 }
 0x109   :  { %v1274_v12 = vpop.f32.mrf.mxu3  ;;  %v1286_v14 = vpop.f32.mrf.mxu0  ;;  %v1256_v33 = vadd.f32 %v1255_v26, %v1237_v30 }
 0x10a   :  { %v1287_v27 = vadd.f32 %v1286_v14, %v1268_v22 }
 0x10b   :  { %v1275_v39 = vadd.f32 %v1274_v12, %v1256_v33 }
 0x10c   :  { %v1296_v34 = vmax.f32 %v1287_v27, 0.0 }
 0x111   :  { %v1291_v28 = vpop.f32.mrf.mxu3  ;;  %v1288_v31 = vpop.f32.mrf.mxu0 }
 0x112   :  { %v1289_v32 = vadd.f32 %v1288_v31, %v1270_v25  ;;  %v1292_v40 = vadd.f32 %v1291_v28, %v1273_v37 }
 0x114   :  { %v1297_v35 = vmax.f32 %v1289_v32, 0.0  ;;  %v1298_v43 = vmax.f32 %v1292_v40, 0.0 }
 0x116   :  { %v1304_v38 = vpack.c.bf16 %v1297_v35, %v1296_v34  ;;  %v1328_v48 = vpop.permute.xlu2 %1327 }
 0x119   :  { %v1293_v41 = vpop.f32.mrf.mxu3 }
 0x11a   :  { %v1294_v42 = vadd.f32 %v1293_v41, %v1275_v39 }
 0x11c   :  { %v1299_v44 = vmax.f32 %v1294_v42, 0.0 }
 0x11e   :  { %v1305_v45 = vpack.c.bf16 %v1299_v44, %v1298_v43 }
 0x120   :  { %1353 = vmatpush.bf16.msrb.mxu1 %v1305_v45  ;;  %2068 = vmatpush.bf16.msrb.mxu2 %v1305_v45 }
 0x124   :  { %1354 = vmatpush.bf16.msrb.mxu1 %v1304_v38  ;;  %2069 = vmatpush.bf16.msrb.mxu2 %v1304_v38 }
 0x127   :  { %1933 = vmatmul.msk.bf16.vlgmr.msrb.gmra.mxu1 %vm1340_vm1, %v2062_v46  ;;  %1934 = vmatmul.msk.bf16.vlgmr.msrb.gmra.mxu2 %vm1340_vm1, %v2063_v47 }
 0x128   :  { %v1323_v51 = vpop.permute.xlu2 %1322 }
 0x130   :  { %v1375_v1 = vpop.permute.xlu2 %1374 }
 0x1a4   :  { %v1356_v49 = vpop.f32.mrf.mxu1 }
 0x1a5   :  { %v1357_v60 = vadd.f32 %v1356_v49, %v1313_v59 }
 0x1a7   :  { %v1366_v63 = vmax.f32 %v1357_v60, 0.0 }
 0x1aa   :  { %v1361_v50 = vpop.f32.mrf.mxu2 }
 0x1ab   :  { %v1362_v55 = vadd.f32 %v1361_v50, %v1323_v51 }
 0x1ac   :  { %v1358_v52 = vpop.f32.mrf.mxu1 }
 0x1ad   :  { %v1359_v57 = vadd.f32 %v1358_v52, %v1318_v56  ;;  %v1368_v61 = vmax.f32 %v1362_v55, 0.0 }
 0x1af   :  { %v1367_v62 = vmax.f32 %v1359_v57, 0.0 }
 0x1b2   :  { %v1363_v53 = vpop.f32.mrf.mxu2 }
 0x1b3   :  { %v1364_v54 = vadd.f32 %v1363_v53, %v1328_v48 }
 0x1b5   :  { %v1369_v58 = vmax.f32 %v1364_v54, 0.0 }
 0x1b7   :  { %1392 = vmatpush.msra.mxu2 %v1369_v58 }
 0x1b9   :  { %1393 = vmatpush.msra.mxu2 %v1368_v61 }
 0x1bb   :  { %1394 = vmatpush.msra.mxu2 %v1367_v62 }
 0x1bd   :  { %1395 = vmatpush.msra.mxu2 %v1366_v63 }
 0x1be   :  { %1935 = vmatmul.msk.f32.vlgmr.msra.gmra.mxu2 %vm1340_vm1, %v1370_v0 }
 0x241   :  { %v1397_v2 = vpop.f32.mrf.mxu2 }
 0x242   :  { %v1398_v3 = vadd.f32 %v1397_v2, %v1375_v1 }
 0x244   :  { %1400 = vst [vmem:[#allocation7] sm:$0x3] %v1398_v3 }
 0x245   :  { %1411 = dma.vmem_to_hbm [thread:$0]  %s1407_s11, 32, %s1409_s14, [#allocation4]  }
 0x246   :  { %2157 = dma.done.wait [#allocation4], 32  }
 0x247   :  { %2158 = vsyncadd [#allocation4], 4294967264 }
 0x248   :  { %1416 = vsyncpa [#allocation3], 1 }
 0x249   :  { %1417 = vsyncpa [#allocation6], 1 }
 0x24a   :  { %1418 = vsyncpa [#allocation4], 1 }

</bundles_post_ra>
